<compile_context>
chip_gen: v6e
topology: v6e:2x2x1
jax: 0.10.0
libtpu: 0.0.40
codegen_flags: <defaults>
</compile_context>

<pallas_src>
import math

import jax
import jax.numpy as jnp
from jax import lax
from jax.experimental import pallas as pl
from jax.experimental.pallas import tpu as pltpu


# ---------------------------------------------------------------------------
# VMEM accounting helpers
# ---------------------------------------------------------------------------

def _vmem_budget_bytes():
    """Conservative per-kernel VMEM budget (v5e/v6e 128 MiB, v7x 64 MiB)."""
    try:
        cap = int(pltpu.get_tpu_info().vmem_capacity_bytes)
    except Exception:
        cap = 64 << 20  # assume the smallest (v7x-like) VMEM if the query fails
    return min(int(cap * 0.75), 96 << 20)


def _rup(x, m):
    return ((x + m - 1) // m) * m


def _tile_bytes(shape, itemsize):
    """Bytes of one VMEM block including (8, 128) sublane/lane padding."""
    padded = list(shape)
    padded[-1] = _rup(padded[-1], 128)
    if len(padded) >= 2:
        padded[-2] = _rup(padded[-2], 8)
    n = 1
    for d in padded:
        n *= d
    return n * itemsize


def _tq_candidates(Sq):
    """Query-tile candidates, capped at 512 rows (roofline-saturating)."""
    if Sq <= 512:
        return [Sq]
    cands = [t for t in (512, 256, 128, 64, 32, 16, 8) if Sq % t == 0]
    return cands if cands else [Sq]


def _choose_single_pass(BH, Sq, est_fn, budget):
    """Pick (heads-per-step G, query tile tq); returns fits=False if nothing fits."""
    tq_cands = _tq_candidates(Sq)
    g_cands = [g for g in (8, 4, 2, 1) if BH % g == 0]
    # Pack several heads per step only when the widest query tile still fits
    # (amortizes the ~0.35us/step overhead for short sequences).
    for G in g_cands:
        if est_fn(G, tq_cands[0]) <= budget:
            return G, tq_cands[0], True
    for tq in tq_cands:
        if est_fn(1, tq) <= budget:
            return 1, tq, True
    return 1, tq_cands[-1], False


def _choose_sk_tiled(Sq, Sk, est_fn, budget):
    """Pick (tq, tk) for the Sk-tiled accumulator kernel, or None if Sk untileable."""
    tks = [t for t in (2048, 1024, 512, 256, 128) if Sk % t == 0]
    if not tks:
        return None
    for tq in _tq_candidates(Sq):
        for tk in tks:
            if est_fn(tq, tk) <= budget:
                return tq, tk
    return _tq_candidates(Sq)[-1], tks[-1]


# ---------------------------------------------------------------------------
# kernels
# ---------------------------------------------------------------------------

def _make_single_pass_kernel(scale, has_mask, return_attn, mm_dtype):
    """Whole-Sk-per-step kernel. scale is a Python float (traced as a literal)."""

    def kernel(*refs):
        if has_mask:
            q_ref, kt_ref, v_ref, m_ref = refs[:4]
            out_refs = refs[4:]
        else:
            q_ref, kt_ref, v_ref = refs[:3]
            m_ref = None
            out_refs = refs[3:]
        if return_attn:
            ctx_ref, attn_ref = out_refs
        else:
            (ctx_ref,) = out_refs

        # Scale the small Q tile (G,tq,Dk), not the (G,tq,Sk) score tile.
        q = (q_ref[...] * scale).astype(mm_dtype)
        kt = kt_ref[...].astype(mm_dtype)

        # (G,tq,Dk) x (G,Dk,Sk) -> (G,tq,Sk): NN contraction on pre-transposed K.
        logits = lax.dot_general(
            q, kt,
            dimension_numbers=(((2,), (1,)), ((0,), (0,))),
            preferred_element_type=jnp.float32,
        )
        # Faithful to the PyTorch module: plain exp, no running-max subtraction.
        scores = jnp.exp(logits)
        if has_mask:
            # Mask block is (G,tq,Sk) or (G,1,Sk); broadcasting handles both.
            scores = scores * m_ref[...].astype(jnp.float32)

        denom = jnp.sum(scores, axis=-1, keepdims=True) + 1e-8
        attn = scores * pl.reciprocal(denom, approx=False)

        ctx = lax.dot_general(
            attn.astype(mm_dtype), v_ref[...].astype(mm_dtype),
            dimension_numbers=(((2,), (1,)), ((0,), (0,))),
            preferred_element_type=jnp.float32,
        )

        ctx_ref[...] = ctx.astype(ctx_ref.dtype)
        if return_attn:
            attn_ref[...] = attn.astype(attn_ref.dtype)

    return kernel


def _make_sk_tiled_kernel(scale, has_mask, mm_dtype):
    """Context-only kernel that tiles Sk with running sum-of-exp / P@V accumulators."""

    def kernel(*refs):
        if has_mask:
            q_ref, kt_ref, v_ref, m_ref = refs[:4]
            rest = refs[4:]
        else:
            q_ref, kt_ref, v_ref = refs[:3]
            m_ref = None
            rest = refs[3:]
        ctx_ref, den_acc, ctx_acc = rest

        kk = pl.program_id(2)

        @pl.when(kk == 0)
        def _():
            den_acc[...] = jnp.zeros_like(den_acc)
            ctx_acc[...] = jnp.zeros_like(ctx_acc)

        q = (q_ref[...] * scale).astype(mm_dtype)
        kt = kt_ref[...].astype(mm_dtype)
        logits = lax.dot_general(
            q, kt,
            dimension_numbers=(((2,), (1,)), ((0,), (0,))),
            preferred_element_type=jnp.float32,
        )
        scores = jnp.exp(logits)
        if has_mask:
            scores = scores * m_ref[...].astype(jnp.float32)

        den_acc[...] += jnp.sum(scores, axis=-1, keepdims=True)
        ctx_acc[...] += lax.dot_general(
            scores.astype(mm_dtype), v_ref[...].astype(mm_dtype),
            dimension_numbers=(((2,), (1,)), ((0,), (0,))),
            preferred_element_type=jnp.float32,
        )

        @pl.when(kk == pl.num_programs(2) - 1)
        def _():
            inv = pl.reciprocal(den_acc[...] + 1e-8, approx=False)
            ctx_ref[...] = (ctx_acc[...] * inv).astype(ctx_ref.dtype)

    return kernel


# ---------------------------------------------------------------------------
# wrapper
# ---------------------------------------------------------------------------

def scaled_dot_product_attention(Q, K, V, attn_mask=None, *, d_k=None,
                                 return_attn=True, matmul_dtype=None,
                                 force_sk_tiling=False):
    """Pallas implementation of ScaledDotProductAttention.forward.

    Q: [B, H, Sq, Dk], K: [B, H, Sk, Dk], V: [B, H, Sk, Dv].
    attn_mask: anything broadcastable to [B, H, Sq, Sk] (multiplicative), or None.

    Returns (context, attn) when return_attn=True (module semantics); with
    return_attn=False only context is computed (skips the large attn HBM write,
    and may use the Sk-tiled accumulator kernel for very long Sk).
    """
    B, H, Sq, Dk = Q.shape
    Sk = K.shape[2]
    Dv = V.shape[3]
    if d_k is None:
        d_k = Dk
    BH = B * H
    scale = 1.0 / math.sqrt(float(d_k))        # Python float -> jaxpr literal

    in_dtype = jnp.result_type(Q.dtype, K.dtype, V.dtype)
    out_dtype = in_dtype
    if matmul_dtype is None:
        # bf16 inputs hit native MXU peak; f32 inputs stay bit-faithful to the module.
        matmul_dtype = jnp.bfloat16 if jnp.dtype(in_dtype).itemsize <= 2 else jnp.float32

    # Native-dtype views; K transposed once so its VMEM tile is lane-dense (·, Sk).
    Q3 = Q.reshape(BH, Sq, Dk)
    K3t = jnp.swapaxes(K.reshape(BH, Sk, Dk), 1, 2)   # (BH, Dk, Sk)
    V3 = V.reshape(BH, Sk, Dv)

    has_mask = attn_mask is not None
    mask_bh = None
    mask_rows = 0
    if has_mask:
        m = jnp.asarray(attn_mask)
        m = m.reshape((1,) * (4 - m.ndim) + m.shape)   # left-pad to 4D
        if m.shape[-2] not in (1, Sq) or m.shape[-1] not in (1, Sk):
            raise ValueError(f"attn_mask shape {attn_mask.shape} is not "
                             f"broadcastable to ({B},{H},{Sq},{Sk})")
        mask_rows = Sq if m.shape[-2] == Sq else 1     # padding masks stay 1 row
        m = jnp.broadcast_to(m, (B, H, mask_rows, Sk))
        mask_bh = m.reshape(BH, mask_rows, Sk)         # native dtype, cast in-kernel

    q_is = jnp.dtype(Q.dtype).itemsize
    k_is = jnp.dtype(K.dtype).itemsize
    v_is = jnp.dtype(V.dtype).itemsize
    m_is = jnp.dtype(mask_bh.dtype).itemsize if has_mask else 0
    o_is = jnp.dtype(out_dtype).itemsize
    mm_is = jnp.dtype(matmul_dtype).itemsize
    budget = _vmem_budget_bytes()

    def sp_bytes(G, tq):
        ins = _tile_bytes((G, tq, Dk), q_is)
        ins += _tile_bytes((G, Dk, Sk), k_is)
        ins += _tile_bytes((G, Sk, Dv), v_is)
        if has_mask:
            ins += _tile_bytes((G, tq if mask_rows != 1 else 1, Sk), m_is)
        outs = _tile_bytes((G, tq, Dv), o_is)
        if return_attn:
            outs += _tile_bytes((G, tq, Sk), o_is)
        # live intermediates: f32 scores + f32 attn + matmul-dtype attn copy
        live = 2 * _tile_bytes((G, tq, Sk), 4) + _tile_bytes((G, tq, Sk), mm_is)
        return 2 * (ins + outs) + live                 # 2x: double-buffered pipeline

    def sk_bytes(tq, tk):
        ins = _tile_bytes((1, tq, Dk), q_is)
        ins += _tile_bytes((1, Dk, tk), k_is)
        ins += _tile_bytes((1, tk, Dv), v_is)
        if has_mask:
            ins += _tile_bytes((1, tq if mask_rows != 1 else 1, tk), m_is)
        outs = _tile_bytes((1, tq, Dv), o_is)
        live = _tile_bytes((1, tq, tk), 4) + _tile_bytes((1, tq, tk), mm_is)
        scratch = _tile_bytes((1, tq, 1), 4) + _tile_bytes((1, tq, Dv), 4)
        return 2 * (ins + outs) + live + scratch

    G, tq, fits = _choose_single_pass(BH, Sq, sp_bytes, budget)

    use_sk = (force_sk_tiling or not fits) and not return_attn
    sk_cfg = _choose_sk_tiled(Sq, Sk, sk_bytes, budget) if use_sk else None
    if sk_cfg is None:
        use_sk = False

    # -------------------------- single-pass path ---------------------------
    if not use_sk:
        grid = (BH // G, Sq // tq)
        in_specs = [
            pl.BlockSpec((G, tq, Dk), lambda g, i: (g, i, 0)),   # Q tile
            pl.BlockSpec((G, Dk, Sk), lambda g, i: (g, 0, 0)),   # K^T (constant over Sq)
            pl.BlockSpec((G, Sk, Dv), lambda g, i: (g, 0, 0)),   # V
        ]
        inputs = [Q3, K3t, V3]
        if has_mask:
            if mask_rows == 1:
                in_specs.append(pl.BlockSpec((G, 1, Sk), lambda g, i: (g, 0, 0)))
            else:
                in_specs.append(pl.BlockSpec((G, tq, Sk), lambda g, i: (g, i, 0)))
            inputs.append(mask_bh)

        out_specs = [pl.BlockSpec((G, tq, Dv), lambda g, i: (g, i, 0))]
        out_shapes = [jax.ShapeDtypeStruct((BH, Sq, Dv), out_dtype)]
        if return_attn:
            out_specs.append(pl.BlockSpec((G, tq, Sk), lambda g, i: (g, i, 0)))
            out_shapes.append(jax.ShapeDtypeStruct((BH, Sq, Sk), out_dtype))

        kernel = _make_single_pass_kernel(scale, has_mask, return_attn, matmul_dtype)
        outs = pl.pallas_call(
            kernel,
            out_shape=tuple(out_shapes),
            grid_spec=pltpu.PrefetchScalarGridSpec(
                num_scalar_prefetch=0,
                grid=grid,
                in_specs=in_specs,
                out_specs=tuple(out_specs),
            ),
            compiler_params=pltpu.CompilerParams(
                # heads "parallel" so 2-TC sharding keeps K/V fetches disjoint;
                # the query-tile axis is "arbitrary" (measured near-zero cost).
                dimension_semantics=("parallel", "arbitrary"),
                vmem_limit_bytes=int(budget),
            ),
        )(*inputs)

        if return_attn:
            ctx, attn = outs
            return ctx.reshape(B, H, Sq, Dv), attn.reshape(B, H, Sq, Sk)
        (ctx,) = outs
        return ctx.reshape(B, H, Sq, Dv)

    # ------------------------ Sk-tiled (context-only) ----------------------
    tq_s, tk_s = sk_cfg
    grid = (BH, Sq // tq_s, Sk // tk_s)
    in_specs = [
        pl.BlockSpec((1, tq_s, Dk), lambda g, i, kk: (g, i, 0)),
        pl.BlockSpec((1, Dk, tk_s), lambda g, i, kk: (g, 0, kk)),
        pl.BlockSpec((1, tk_s, Dv), lambda g, i, kk: (g, kk, 0)),
    ]
    inputs = [Q3, K3t, V3]
    if has_mask:
        if mask_rows == 1:
            in_specs.append(pl.BlockSpec((1, 1, tk_s), lambda g, i, kk: (g, 0, kk)))
        else:
            in_specs.append(pl.BlockSpec((1, tq_s, tk_s), lambda g, i, kk: (g, i, kk)))
        inputs.append(mask_bh)

    kernel = _make_sk_tiled_kernel(scale, has_mask, matmul_dtype)
    (ctx,) = pl.pallas_call(
        kernel,
        out_shape=(jax.ShapeDtypeStruct((BH, Sq, Dv), out_dtype),),
        grid_spec=pltpu.PrefetchScalarGridSpec(
            num_scalar_prefetch=0,
            grid=grid,
            in_specs=in_specs,
            out_specs=(pl.BlockSpec((1, tq_s, Dv), lambda g, i, kk: (g, i, 0)),),
            scratch_shapes=[pltpu.VMEM((1, tq_s, 1), jnp.float32),
                            pltpu.VMEM((1, tq_s, Dv), jnp.float32)],
        ),
        compiler_params=pltpu.CompilerParams(
            dimension_semantics=("parallel", "arbitrary", "arbitrary"),
            vmem_limit_bytes=int(budget),
        ),
    )(*inputs)
    return ctx.reshape(B, H, Sq, Dv)


# ---------------------------------------------------------------------------
# reference + self-test
# ---------------------------------------------------------------------------

def _reference(Q, K, V, attn_mask, d_k):
    Qf, Kf, Vf = (x.astype(jnp.float32) for x in (Q, K, V))
    scores = jnp.matmul(Qf, jnp.swapaxes(Kf, -1, -2)) / math.sqrt(float(d_k))
    scores = jnp.exp(scores)
    if attn_mask is not None:
        scores = scores * attn_mask.astype(jnp.float32)
    attn = scores / (jnp.sum(scores, axis=-1, keepdims=True) + 1e-8)
    context = jnp.matmul(attn, Vf)
    return context, attn


if __name__ == "__main__":
    key = jax.random.PRNGKey(0)
    kq, kk_, kv, km = jax.random.split(key, 4)

    B, H, S, Dk = 2, 2, 8, 32
    Q = jax.random.normal(kq, (B, H, S, Dk), dtype=jnp.float32)
    K = jax.random.normal(kk_, (B, H, S, Dk), dtype=jnp.float32)
    V = jax.random.normal(kv, (B, H, S, Dk), dtype=jnp.float32)
    attn_mask = (jax.random.uniform(km, (B, H, S, S)) > 0.2).astype(jnp.float32)

    # 1) full multiplicative mask, f32 (exact path)
    ctx, attn = scaled_dot_product_attention(Q, K, V, attn_mask, d_k=Dk)
    jax.block_until_ready((ctx, attn))
    ctx_ref, attn_ref = _reference(Q, K, V, attn_mask, Dk)
    assert jnp.allclose(ctx, ctx_ref, atol=1e-4, rtol=1e-4)
    assert jnp.allclose(attn, attn_ref, atol=1e-4, rtol=1e-4)

    # 2) no mask (mask-free kernel variant; no synthetic ones-mask built)
    ctx2, attn2 = scaled_dot_product_attention(Q, K, V, None, d_k=Dk)
    jax.block_until_ready((ctx2, attn2))
    ctx2_ref, attn2_ref = _reference(Q, K, V, None, Dk)
    assert jnp.allclose(ctx2, ctx2_ref, atol=1e-4, rtol=1e-4)
    assert jnp.allclose(attn2, attn2_ref, atol=1e-4, rtol=1e-4)

    # 3) broadcastable padding mask [B,1,1,Sk], context-only fast path
    pad_mask = (jax.random.uniform(km, (B, 1, 1, S)) > 0.3).astype(jnp.float32)
    ctx3 = scaled_dot_product_attention(Q, K, V, pad_mask, d_k=Dk, return_attn=False)
    jax.block_until_ready(ctx3)
    ctx3_ref, _ = _reference(Q, K, V, pad_mask, Dk)
    assert jnp.allclose(ctx3, ctx3_ref, atol=1e-4, rtol=1e-4)

    # 4) native bf16 inputs (no wrapper upcast, bf16 MXU matmuls, bf16 outputs)
    Qb, Kb, Vb = (x.astype(jnp.bfloat16) for x in (Q, K, V))
    ctxb, attnb = scaled_dot_product_attention(Qb, Kb, Vb, attn_mask, d_k=Dk)
    jax.block_until_ready((ctxb, attnb))
    assert ctxb.dtype == jnp.bfloat16 and attnb.dtype == jnp.bfloat16
    assert jnp.allclose(ctxb.astype(jnp.float32), ctx_ref, atol=0.25, rtol=0.1)
    assert jnp.allclose(attnb.astype(jnp.float32), attn_ref, atol=0.1, rtol=0.1)

    # 5) Sk-tiled accumulator fallback (forced; context-only), padding mask
    k2 = jax.random.PRNGKey(1)
    k2q, k2k, k2v, k2m = jax.random.split(k2, 4)
    B2, H2, Sq2, Sk2, D2 = 1, 2, 128, 640, 32
    Q2 = jax.random.normal(k2q, (B2, H2, Sq2, D2), dtype=jnp.float32)
    K2 = jax.random.normal(k2k, (B2, H2, Sk2, D2), dtype=jnp.float32)
    V2 = jax.random.normal(k2v, (B2, H2, Sk2, D2), dtype=jnp.float32)
    pad2 = (jax.random.uniform(k2m, (B2, 1, 1, Sk2)) > 0.1).astype(jnp.float32)
    ctx5 = scaled_dot_product_attention(Q2, K2, V2, pad2, d_k=D2,
                                        return_attn=False, force_sk_tiling=True)
    jax.block_until_ready(ctx5)
    ctx5_ref, _ = _reference(Q2, K2, V2, pad2, D2)
    assert jnp.allclose(ctx5, ctx5_ref, atol=1e-3, rtol=1e-3)

    print("KERNEL_OK")
</pallas_src>

<mosaic_0001>
module attributes {stable_mosaic.version = 11 : i64} {
  func.func @kernel(%arg0: i32, %arg1: i32, %arg2: memref<4x8x32xf32, #tpu.memory_space<vmem>>, %arg3: memref<4x32x8xf32, #tpu.memory_space<vmem>>, %arg4: memref<4x8x32xf32, #tpu.memory_space<vmem>>, %arg5: memref<4x8x8xf32, #tpu.memory_space<vmem>>, %arg6: memref<4x8x32xf32, #tpu.memory_space<vmem>>, %arg7: memref<4x8x8xf32, #tpu.memory_space<vmem>>) attributes {dimension_semantics = [#tpu.dimension_semantics<parallel>, #tpu.dimension_semantics<arbitrary>], iteration_bounds = array<i64: 1, 1>, scalar_prefetch = 0 : i64, scratch_operands = 0 : i64, tpu.core_type = #tpu.core_type<tc>, window_params = [{transform_indices = @transform_0, window_bounds = array<i64: 4, 8, 32>}, {transform_indices = @transform_1, window_bounds = array<i64: 4, 32, 8>}, {transform_indices = @transform_2, window_bounds = array<i64: 4, 8, 32>}, {transform_indices = @transform_3, window_bounds = array<i64: 4, 8, 8>}, {transform_indices = @transform_4, window_bounds = array<i64: 4, 8, 32>}, {transform_indices = @transform_5, window_bounds = array<i64: 4, 8, 8>}]} {
    %c0 = arith.constant 0 : index
    %c0_0 = arith.constant 0 : index
    %c0_1 = arith.constant 0 : index
    %0 = vector.load %arg2[%c0, %c0_0, %c0_1] : memref<4x8x32xf32, #tpu.memory_space<vmem>>, vector<4x8x32xf32>
    %cst = arith.constant 0.176776692 : f32
    %1 = vector.broadcast %cst : f32 to vector<4x8x32xf32>
    %2 = arith.mulf %0, %1 : vector<4x8x32xf32>
    %c0_2 = arith.constant 0 : index
    %c0_3 = arith.constant 0 : index
    %c0_4 = arith.constant 0 : index
    %3 = vector.load %arg3[%c0_2, %c0_3, %c0_4] : memref<4x32x8xf32, #tpu.memory_space<vmem>>, vector<4x32x8xf32>
    %cst_5 = arith.constant dense<0.000000e+00> : vector<4x8x8xf32>
    %4 = tpu.matmul %2, %3, %cst_5 {dimension_numbers = #tpu.dot_dimension_numbers<[2], [1], [1], [2], [0, 0, 0, 1, 1, 2], [0], [0]>} : vector<4x8x32xf32>, vector<4x32x8xf32>, vector<4x8x8xf32> -> vector<4x8x8xf32>
    %5 = math.exp %4 : vector<4x8x8xf32>
    %c0_6 = arith.constant 0 : index
    %c0_7 = arith.constant 0 : index
    %c0_8 = arith.constant 0 : index
    %6 = vector.load %arg5[%c0_6, %c0_7, %c0_8] : memref<4x8x8xf32, #tpu.memory_space<vmem>>, vector<4x8x8xf32>
    %7 = arith.mulf %5, %6 : vector<4x8x8xf32>
    %cst_9 = arith.constant dense<0.000000e+00> : vector<4x8xf32>
    %8 = vector.multi_reduction <add>, %7, %cst_9 [2] : vector<4x8x8xf32> to vector<4x8xf32>
    %9 = vector.shape_cast %8 : vector<4x8xf32> to vector<4x8x1xf32>
    %cst_10 = arith.constant 9.99999993E-9 : f32
    %10 = vector.broadcast %cst_10 : f32 to vector<4x8x1xf32>
    %11 = arith.addf %9, %10 : vector<4x8x1xf32>
    %12 = tpu.reciprocal %11 : vector<4x8x1xf32> -> vector<4x8x1xf32>
    %13 = vector.broadcast %12 : vector<4x8x1xf32> to vector<4x8x8xf32>
    %14 = arith.mulf %7, %13 : vector<4x8x8xf32>
    %c0_11 = arith.constant 0 : index
    %c0_12 = arith.constant 0 : index
    %c0_13 = arith.constant 0 : index
    %15 = vector.load %arg4[%c0_11, %c0_12, %c0_13] : memref<4x8x32xf32, #tpu.memory_space<vmem>>, vector<4x8x32xf32>
    %cst_14 = arith.constant dense<0.000000e+00> : vector<4x8x32xf32>
    %16 = tpu.matmul %14, %15, %cst_14 {dimension_numbers = #tpu.dot_dimension_numbers<[2], [1], [1], [2], [0, 0, 0, 1, 1, 2], [0], [0]>} : vector<4x8x8xf32>, vector<4x8x32xf32>, vector<4x8x32xf32> -> vector<4x8x32xf32>
    %c0_15 = arith.constant 0 : index
    %c0_16 = arith.constant 0 : index
    %c0_17 = arith.constant 0 : index
    %17 = vector.load %arg6[%c0_15, %c0_16, %c0_17] : memref<4x8x32xf32, #tpu.memory_space<vmem>>, vector<4x8x32xf32>
    tpu.vector_store %arg6[%c0_15, %c0_16, %c0_17], %16 {strides = array<i32>} : memref<4x8x32xf32, #tpu.memory_space<vmem>>, vector<4x8x32xf32>,
    %c0_18 = arith.constant 0 : index
    %c0_19 = arith.constant 0 : index
    %c0_20 = arith.constant 0 : index
    %18 = vector.load %arg7[%c0_18, %c0_19, %c0_20] : memref<4x8x8xf32, #tpu.memory_space<vmem>>, vector<4x8x8xf32>
    tpu.vector_store %arg7[%c0_18, %c0_19, %c0_20], %14 {strides = array<i32>} : memref<4x8x8xf32, #tpu.memory_space<vmem>>, vector<4x8x8xf32>,
    return
  }
  func.func @transform_0(%arg0: i32, %arg1: i32) -> (i32, i32, i32) {
    %c0_i32 = arith.constant 0 : i32
    %c0_i32_0 = arith.constant 0 : i32
    return %arg0, %arg1, %c0_i32 : i32, i32, i32
  }
  func.func @transform_1(%arg0: i32, %arg1: i32) -> (i32, i32, i32) {
    %c0_i32 = arith.constant 0 : i32
    %c0_i32_0 = arith.constant 0 : i32
    %c0_i32_1 = arith.constant 0 : i32
    return %arg0, %c0_i32, %c0_i32_0 : i32, i32, i32
  }
  func.func @transform_2(%arg0: i32, %arg1: i32) -> (i32, i32, i32) {
    %c0_i32 = arith.constant 0 : i32
    %c0_i32_0 = arith.constant 0 : i32
    %c0_i32_1 = arith.constant 0 : i32
    return %arg0, %c0_i32, %c0_i32_0 : i32, i32, i32
  }
  func.func @transform_3(%arg0: i32, %arg1: i32) -> (i32, i32, i32) {
    %c0_i32 = arith.constant 0 : i32
    %c0_i32_0 = arith.constant 0 : i32
    return %arg0, %arg1, %c0_i32 : i32, i32, i32
  }
  func.func @transform_4(%arg0: i32, %arg1: i32) -> (i32, i32, i32) {
    %c0_i32 = arith.constant 0 : i32
    %c0_i32_0 = arith.constant 0 : i32
    return %arg0, %arg1, %c0_i32 : i32, i32, i32
  }
  func.func @transform_5(%arg0: i32, %arg1: i32) -> (i32, i32, i32) {
    %c0_i32 = arith.constant 0 : i32
    %c0_i32_0 = arith.constant 0 : i32
    return %arg0, %arg1, %c0_i32 : i32, i32, i32
  }
}

</mosaic_0001>

<bundles_post_ra>
// kernel: tpu_custom_call.1
= control target key start
LH: loop header
LB: loop body
LE: loop exit
PB: predicated region body
PF: predicated region fallthrough
CT: control target
= control target key end

     0   :  { %11 = vsyncpa [#allocation3], 0  ;;  %v881_v2 = vmov 0.0   ;;  %vm882_vm0 = vmmov 0   ;;  %vm45_vm1 = vcmask 261120   ;;  %s1063_s0 = inlined_call_operand.vmem [shape: f32[4,8,32], index: 0, kind: input, shape index: {}]   ;;  %s1064_s1 = inlined_call_operand.vmem [shape: f32[4,32,8], index: 1, kind: input, shape index: {}]   ;;  %s1065_s2 = inlined_call_operand.vmem [shape: f32[4,8,32], index: 2, kind: input, shape index: {}]   ;;  %s1066_s3 = inlined_call_operand.vmem [shape: f32[4,8,8], index: 3, kind: input, shape index: {}]   ;;  %s1067_s4 = inlined_call_operand.hbm [shape: f32[4,8,32], index: 4, kind: output, shape index: {0}]   ;;  %s1068_s5 = inlined_call_operand.hbm [shape: f32[4,8,8], index: 5, kind: output, shape index: {1}]  }
   0x1   :  { %v32_v0 = vld [vmem:[%s1064_s1 + $0x18] sm:$0xff]  ;;  %751 = vmatprep.subr.mxu0 %v881_v2  ;;  %762 = vmatprep.subr.mxu1 %v881_v2  ;;  %v31_v3 = vld [vmem:[%s1064_s1 + $0x10] sm:$0xff]  ;;  %v21_v5 = vld [vmem:[%s1063_s0] sm:$0xff] }
   0x2   :  { %v36_v1 = vld [vmem:[%s1064_s1 + $0x38] sm:$0xff]  ;;  %v35_v4 = vld [vmem:[%s1064_s1 + $0x30] sm:$0xff]  ;;  %752 = vmatpush3.msra.mxu0 %v32_v0  ;;  %v30_v6 = vld [vmem:[%s1064_s1 + $0x8] sm:$0xff]  ;;  %v25_v9 = vmul.f32 0.17677669, %v21_v5  ;;  %759 = vmatprep.mubr.msk.f32.mxu0 %vm882_vm0, %v881_v2 }
   0x3   :  { %763 = vmatpush3.msra.mxu1 %v36_v1  ;;  %753 = vmatprep.subr.mxu0 %v881_v2  ;;  %v34_v7 = vld [vmem:[%s1064_s1 + $0x28] sm:$0xff]  ;;  %v29_v8 = vld [vmem:[%s1064_s1] sm:$0xff] }
   0x4   :  { %764 = vmatprep.subr.mxu1 %v881_v2  ;;  %754 = vmatpush3.msra.mxu0 %v31_v3  ;;  %v22_v10 = vld [vmem:[%s1063_s0 + $0x8] sm:$0xff] }
   0x5   :  { %765 = vmatpush3.msra.mxu1 %v35_v4  ;;  %755 = vmatprep.subr.mxu0 %v881_v2 }
   0x6   :  { %766 = vmatprep.subr.mxu1 %v881_v2  ;;  %756 = vmatpush3.msra.mxu0 %v30_v6 }
   0x7   :  { %12 = vsyncpa [#allocation5], 0  ;;  %757 = vmatprep.subr.mxu0 %v881_v2  ;;  %767 = vmatpush3.msra.mxu1 %v34_v7  ;;  %v33_v11 = vld [vmem:[%s1064_s1 + $0x20] sm:$0xff]  ;;  %v40_v12 = vld [vmem:[%s1064_s1 + $0x58] sm:$0xff]  ;;  %v26_v13 = vmul.f32 0.17677669, %v22_v10 }
   0x8   :  { %758 = vmatpush3.msra.mxu0 %v29_v8  ;;  %768 = vmatprep.subr.mxu1 %v881_v2  ;;  %v39_v14 = vld [vmem:[%s1064_s1 + $0x50] sm:$0xff]  ;;  %v44_v15 = vld [vmem:[%s1064_s1 + $0x78] sm:$0xff]  ;;  %v38_v17 = vld [vmem:[%s1064_s1 + $0x48] sm:$0xff]  ;;  %vm354_vm2 = vcmask 64512  }
   0x9   :  { %760 = vmatmul.mubr.msk.f32.vlgmr.msra.gmra.mxu0 %vm45_vm1, %v25_v9  ;;  %773 = vmatprep.subr.mxu0 %v881_v2  ;;  %v23_v16 = vld [vmem:[%s1063_s0 + $0x10] sm:$0xff]  ;;  %v37_v19 = vld [vmem:[%s1064_s1 + $0x40] sm:$0xff]  ;;  %v24_v21 = vld [vmem:[%s1063_s0 + $0x18] sm:$0xff] }
   0xa   :  { %769 = vmatpush3.msra.mxu1 %v33_v11  ;;  %774 = vmatpush3.msra.mxu0 %v40_v12  ;;  %v43_v18 = vld [vmem:[%s1064_s1 + $0x70] sm:$0xff]  ;;  %v27_v20 = vmul.f32 0.17677669, %v23_v16  ;;  %v42_v22 = vld [vmem:[%s1064_s1 + $0x68] sm:$0xff]  ;;  %v41_v23 = vld [vmem:[%s1064_s1 + $0x60] sm:$0xff] }
   0xb   :  { %770 = vmatprep.mubr.msk.f32.mxu1 %vm882_vm0, %v881_v2  ;;  %775 = vmatprep.subr.mxu0 %v881_v2  ;;  %v28_v24 = vmul.f32 0.17677669, %v24_v21  ;;  %v346_v37 = vld [vmem:[%s1066_s3] sm:$0xff]  ;;  %v347_v40 = vld [vmem:[%s1066_s3 + $0x8] sm:$0xff]  ;;  %v348_v45 = vld [vmem:[%s1066_s3 + $0x10] sm:$0xff] }
   0xc   :  { %784 = vmatprep.subr.mxu1 %v881_v2  ;;  %771 = vmatmul.mubr.msk.f32.vlgmr.msra.gmra.mxu1 %vm45_vm1, %v26_v13  ;;  %v349_v48 = vld [vmem:[%s1066_s3 + $0x18] sm:$0xff]  ;;  %v379_v53 = vld [vmem:[%s1065_s2] sm:$0xff]  ;;  %v380_v54 = vld [vmem:[%s1065_s2 + $0x8] sm:$0xff] }
   0xd   :  { %776 = vmatpush3.msra.mxu0 %v39_v14  ;;  %785 = vmatpush3.msra.mxu1 %v44_v15  ;;  %v381_v1 = vld [vmem:[%s1065_s2 + $0x10] sm:$0xff]  ;;  %v382_v5 = vld [vmem:[%s1065_s2 + $0x18] sm:$0xff]  ;;  %s883_s2 = smov [#allocation4]  }
   0xe   :  { %777 = vmatprep.subr.mxu0 %v881_v2  ;;  %786 = vmatprep.subr.mxu1 %v881_v2  ;;  %s700_s21 = sshll.u32 %s883_s2, 4  ;;  %s701_s21 = int_to_ptr.vmem [resolvable:$true] %s700_s21 }
   0xf   :  { %778 = vmatpush3.msra.mxu0 %v38_v17  ;;  %787 = vmatpush3.msra.mxu1 %v43_v18  ;;  %s837_s22 = scalar_lea.vmem %s701_s21, 512  ;;  %p842_p1 = scmp.lt.s32.totalorder %s701_s21, %s701_s21 }
  0x10   :  { %779 = vmatprep.subr.mxu0 %v881_v2  ;;  %788 = vmatprep.subr.mxu1 %v881_v2  ;;  %p838_p0 = scmp.ne.s32.totalorder %s701_s21, %s837_s22  ;;  %p843_p2 = scmp.lt.s32.totalorder %s837_s22, %s837_s22 }
  0x11   :  { %780 = vmatpush3.msra.mxu0 %v37_v19  ;;  %781 = vmatprep.mubr.msk.f32.mxu0 %vm882_vm0, %v881_v2 }
  0x12   :  { %789 = vmatpush3.msra.mxu1 %v42_v22  ;;  %782 = vmatmul.mubr.msk.f32.vlgmr.msra.gmra.mxu0 %vm45_vm1, %v27_v20  ;;  %p844_p3 = por %p843_p2, %p842_p1 }
  0x13   :  { %790 = vmatprep.subr.mxu1 %v881_v2  ;;  %792 = vmatprep.mubr.msk.f32.mxu1 %vm882_vm0, %v881_v2 }
  0x14   :  { %791 = vmatpush3.msra.mxu1 %v41_v23  ;;  %795 = vmatprep.subr.mxu0 %v881_v2  ;;  %p845_p4 = pnand %p844_p3, %p838_p0 }
  0x15   :  { %793 = vmatmul.mubr.msk.f32.vlgmr.msra.gmra.mxu1 %vm45_vm1, %v28_v24  ;;  %797 = vmatprep.mubr.msk.f32.mxu0 %vm882_vm0, %v881_v2 }
  0x16   :  { %800 = vmatprep.subr.mxu1 %v881_v2  ;;  %802 = vmatprep.mubr.msk.f32.mxu1 %vm882_vm0, %v881_v2 }
  0x17   :  { %796 = vmatpush3.msra.mxu0 %v379_v53  ;;  %801 = vmatpush3.msra.mxu1 %v380_v54 }
  0x18   :  { %805 = vmatprep.subr.mxu0 %v881_v2  ;;  %810 = vmatprep.subr.mxu1 %v881_v2 }
  0xc9   :  { %v115_v25 = vpop.f32.mrf.mxu0 }
  0xca   :  { %v338_v26 = vmul.f32 1.442695, %v115_v25 }
  0xcb   :  { %v761_v27 = vpop.f32.mrf.mxu0 }
  0xcc   :  { %821 = vpow2.f32 %v338_v26  ;;  %v188_v28 = vpop.f32.mrf.mxu1 }
  0xcd   :  { %v340_v29 = vmul.f32 1.442695, %v188_v28 }
  0xce   :  { %v772_v30 = vpop.f32.mrf.mxu1 }
  0xcf   :  { %823 = vpow2.f32 %v340_v29 }
  0xd2   :  { %v261_v31 = vpop.f32.mrf.mxu0 }
  0xd3   :  { %v342_v32 = vmul.f32 1.442695, %v261_v31 }
  0xd4   :  { %v783_v33 = vpop.f32.mrf.mxu0 }
  0xd5   :  { %825 = vpow2.f32 %v342_v32  ;;  %v334_v34 = vpop.f32.mrf.mxu1 }
  0xd6   :  { %v344_v35 = vmul.f32 1.442695, %v334_v34 }
  0xd7   :  { %v794_v36 = vpop.f32.mrf.mxu1 }
  0xd8   :  { %827 = vpow2.f32 %v344_v35 }
  0xd9   :  { %v822_v38 = vpop.eup %821 }
  0xda   :  { %v350_v39 = vmul.f32 %v822_v38, %v346_v37 }
  0xdc   :  { %v824_v41 = vpop.eup %823  ;;  %v355_v42 = vsel %vm354_vm2, %v350_v39, 0.0 }
  0xdd   :  { %356 = vadd.xlane.f32.xlu0 %v355_v42  ;;  %v351_v43 = vmul.f32 %v824_v41, %v347_v40 }
  0xdf   :  { %v358_v44 = vsel %vm354_vm2, %v351_v43, 0.0 }
  0xe1   :  { %359 = vadd.xlane.f32.xlu0 %v358_v44 }
  0xe2   :  { %v826_v46 = vpop.eup %825 }
  0xe3   :  { %v352_v47 = vmul.f32 %v826_v46, %v348_v45 }
  0xe5   :  { %v828_v49 = vpop.eup %827  ;;  %v361_v50 = vsel %vm354_vm2, %v352_v47, 0.0 }
  0xe6   :  { %362 = vadd.xlane.f32.xlu1 %v361_v50  ;;  %v353_v51 = vmul.f32 %v828_v49, %v349_v48 }
  0xe8   :  { %v364_v52 = vsel %vm354_vm2, %v353_v51, 0.0 }
  0xea   :  { %365 = vadd.xlane.f32.xlu1 %v364_v52 }
 0x166   :  { %v357_v55 = vpop.xlane.xlu0 %356 }
 0x167   :  { %v367_v56 = vadd.f32 1e-08, %v357_v55 }
 0x169   :  { %829 = vrcp.f32 %v367_v56 }
 0x16a   :  { %v360_v57 = vpop.xlane.xlu0 %359 }
 0x16b   :  { %v368_v58 = vadd.f32 1e-08, %v360_v57 }
 0x16d   :  { %831 = vrcp.f32 %v368_v58 }
 0x16f   :  { %v363_v59 = vpop.xlane.xlu1 %362 }
 0x170   :  { %v369_v60 = vadd.f32 1e-08, %v363_v59 }
 0x172   :  { %833 = vrcp.f32 %v369_v60 }
 0x173   :  { %v366_v61 = vpop.xlane.xlu1 %365 }
 0x174   :  { %v370_v62 = vadd.f32 1e-08, %v366_v61 }
 0x176   :  { %v830_v63 = vpop.eup %829  ;;  %835 = vrcp.f32 %v370_v62 }
 0x177   :  { %v375_v0 = vmul.f32 %v830_v63, %v350_v39 }
 0x179   :  { %798 = vmatmul.mubr.msk.f32.vlgmr.msra.gmra.mxu0 %vm354_vm2, %v375_v0  ;;  %679 = vst.msk [vmem:[#allocation4] sm:$0xff] %vm354_vm2, %v375_v0 }
 0x17a   :  { %v832_v3 = vpop.eup %831  ;;  %806 = vmatpush3.msra.mxu0 %v381_v1  ;;  %807 = vmatprep.mubr.msk.f32.mxu0 %vm882_vm0, %v881_v2 }
 0x17b   :  { %v376_v4 = vmul.f32 %v832_v3, %v351_v43 }
 0x17d   :  { %803 = vmatmul.mubr.msk.f32.vlgmr.msra.gmra.mxu1 %vm354_vm2, %v376_v4  ;;  %680 = vst.msk [vmem:[#allocation4 + $0x8] sm:$0xff] %vm354_vm2, %v376_v4 }
 0x17e   :  { %811 = vmatpush3.msra.mxu1 %v382_v5  ;;  %812 = vmatprep.mubr.msk.f32.mxu1 %vm882_vm0, %v881_v2 }
 0x17f   :  { %v834_v6 = vpop.eup %833 }
 0x180   :  { %v377_v7 = vmul.f32 %v834_v6, %v352_v47 }
 0x182   :  { %808 = vmatmul.mubr.msk.f32.vlgmr.msra.gmra.mxu0 %vm354_vm2, %v377_v7  ;;  %681 = vst.msk [vmem:[#allocation4 + $0x10] sm:$0xff] %vm354_vm2, %v377_v7 }
 0x183   :  { %v836_v8 = vpop.eup %835 }
 0x184   :  { %v378_v9 = vmul.f32 %v836_v8, %v353_v51 }
 0x186   :  { %813 = vmatmul.mubr.msk.f32.vlgmr.msra.gmra.mxu1 %vm354_vm2, %v378_v9  ;;  %682 = vst.msk [vmem:[#allocation4 + $0x18] sm:$0xff] %vm354_vm2, %v378_v9 }
 0x187   :  { %848 = shalt.err (!%p845_p4)
}
 0x188   :  { %s884_s23 = smov 128   ;;  %s885_s24 = smov 8  }
 0x189   :  { %706 = dma.vmem_to_hbm [thread:$0]  %s701_s21, 512, %s1068_s5, [#allocation5], %s884_s23, %s884_s23, %s885_s24  }
 0x18a   :  { %s886_s27 = smov [#allocation2]  }
 0x18b   :  { %s688_s28 = sshll.u32 %s886_s27, 4  ;;  %s689_s28 = int_to_ptr.vmem [resolvable:$true] %s688_s28 }
 0x18c   :  { %s857_s5 = scalar_lea.vmem %s689_s28, 512  ;;  %p862_p6 = scmp.lt.s32.totalorder %s689_s28, %s689_s28 }
 0x18d   :  { %p858_p5 = scmp.ne.s32.totalorder %s689_s28, %s857_s5  ;;  %p863_p7 = scmp.lt.s32.totalorder %s857_s5, %s857_s5 }
 0x18f   :  { %p864_p8 = por %p863_p7, %p862_p6 }
 0x191   :  { %p865_p9 = pnand %p864_p8, %p858_p5 }
 0x239   :  { %v452_v2 = vpop.f32.mrf.mxu0 }
 0x23a   :  { %675 = vst.msk [vmem:[#allocation2] sm:$0xff] %vm45_vm1, %v452_v2 }
 0x23b   :  { %v799_v10 = vpop.f32.mrf.mxu0 }
 0x23d   :  { %v525_v11 = vpop.f32.mrf.mxu1 }
 0x23e   :  { %676 = vst.msk [vmem:[#allocation2 + $0x8] sm:$0xff] %vm45_vm1, %v525_v11 }
 0x23f   :  { %v804_v12 = vpop.f32.mrf.mxu1 }
 0x242   :  { %v598_v13 = vpop.f32.mrf.mxu0 }
 0x243   :  { %677 = vst.msk [vmem:[#allocation2 + $0x10] sm:$0xff] %vm45_vm1, %v598_v13 }
 0x244   :  { %v809_v14 = vpop.f32.mrf.mxu0 }
 0x246   :  { %v671_v15 = vpop.f32.mrf.mxu1 }
 0x247   :  { %678 = vst.msk [vmem:[#allocation2 + $0x18] sm:$0xff] %vm45_vm1, %v671_v15 }
 0x248   :  { %v814_v16 = vpop.f32.mrf.mxu1 }
 0x249   :  { %868 = shalt.err (!%p865_p9)
}
 0x24a   :  { %694 = dma.vmem_to_hbm [thread:$0]  %s689_s28, 512, %s1067_s4, [#allocation3], %s884_s23, %s884_s23, %s885_s24  }
 0x24b   :  { %877 = dma.done.wait [#allocation3], 512  }
 0x24c   :  { %878 = vsyncadd [#allocation3], 4294966784 }
 0x24d   :  { %879 = dma.done.wait [#allocation5], 512  }
 0x24e   :  { %880 = vsyncadd [#allocation5], 4294966784 }
 0x24f   :  { %713 = vsyncpa [#allocation3], 1 }
 0x250   :  { %714 = vsyncpa [#allocation5], 1 }

</bundles_post_ra>
